<compile_context>
chip_gen: v5e
topology: v5e:2x2
jax: 0.10.0
libtpu: 0.0.40
codegen_flags: <defaults>
</compile_context>

<pallas_src>
import math

import jax
import jax.numpy as jnp
from jax.experimental import pallas as pl
from jax.experimental.pallas import tpu as pltpu


def eca_block_forward(x, conv_w, *, target_block_bytes=4 * 1024 * 1024):
    """x: (N, C, H, W); conv_w: (1, 1, k) Conv1d weight (no bias)."""
    N, C, H, W = x.shape
    HW = H * W
    k = int(conv_w.shape[-1])
    pad = (k - 1) // 2
    w = conv_w.reshape(k).astype(jnp.float32)

    # --- block sizing: pack whole batch items up to ~target_block_bytes ------
    per_item = C * HW * x.dtype.itemsize
    nb = max(1, min(N, target_block_bytes // max(1, per_item)))
    if N >= 2:                      # keep >=2 grid steps so megacore has work
        nb = min(nb, max(1, N // 2))
    while N % nb:                   # blocks must tile the batch exactly
        nb -= 1
    grid_n = N // nb

    block_bytes = nb * per_item
    # double-buffered input + output blocks (+ slack); request explicitly.
    vmem_limit = int(min(100 * 2**20, max(16 * 2**20, 4 * block_bytes + 2 * 2**20)))
    # TODO(synk): for a single item far larger than VMEM (C*HW*itemsize >> 16 MiB)
    # a two-pass variant (HW-tiled pooling pass + HW-tiled multiply pass) would be
    # needed; not required for typical ECA placements or this test shape.

    inv_hw = 1.0 / HW
    xr = x.reshape(N, C, HW)

    def kernel(w_ref, x_ref, o_ref):
        # w_ref: SMEM (k,) f32 ; x_ref/o_ref: VMEM (nb, C, HW) in x.dtype
        xb = x_ref[...]
        # Global average pool over spatial; f32 accumulation for the reduction only.
        y = jnp.sum(xb, axis=-1, keepdims=True, dtype=jnp.float32) * inv_hw  # (nb,C,1)

        # k-tap zero-padded cross-correlation along channels via roll + mask
        # (XLU sublane roll + VPU weighted adds; weights are k SMEM scalars).
        z = jnp.zeros((nb, C, 1), jnp.float32)
        if k > 1:
            ch = jax.lax.broadcasted_iota(jnp.int32, (nb, C, 1), 1)
        for j in range(k):
            d = j - pad                                   # tap offset
            if d == 0:
                z = z + w_ref[j] * y                      # center tap: always valid
            else:
                t = pltpu.roll(y, shift=(-d) % C, axis=1)
                valid = jnp.logical_and(ch + d >= 0, ch + d < C)
                z = z + w_ref[j] * jnp.where(valid, t, 0.0)

        s = jax.nn.sigmoid(z)                             # (nb, C, 1) f32
        # Broadcast multiply in the input dtype (per-channel scale over spatial).
        o_ref[...] = xb * s.astype(xb.dtype)

    out = pl.pallas_call(
        kernel,
        out_shape=jax.ShapeDtypeStruct((N, C, HW), x.dtype),
        grid_spec=pltpu.PrefetchScalarGridSpec(
            num_scalar_prefetch=0,
            grid=(grid_n,),
            in_specs=[
                pl.BlockSpec(memory_space=pltpu.MemorySpace.SMEM),   # k conv weights
                pl.BlockSpec((nb, C, HW), lambda n: (n, 0, 0)),
            ],
            out_specs=pl.BlockSpec((nb, C, HW), lambda n: (n, 0, 0)),
        ),
        compiler_params=pltpu.CompilerParams(
            dimension_semantics=("parallel",),
            vmem_limit_bytes=vmem_limit,
        ),
    )(w, xr)
    return out.reshape(N, C, H, W)


def eca_reference(x, conv_w):
    """Pure-JAX reference matching the PyTorch module semantics."""
    N, C, H, W = x.shape
    k = conv_w.shape[-1]
    pad = (k - 1) // 2
    y = jnp.mean(x, axis=(2, 3))                          # (N, C)
    yp = jnp.pad(y, ((0, 0), (pad, pad)))
    w = conv_w.reshape(k)
    out = jnp.zeros_like(y)
    for j in range(k):
        out = out + w[j] * yp[:, j:j + C]
    s = jax.nn.sigmoid(out)
    return x * s[:, :, None, None]


if __name__ == "__main__":
    # Module config: eca_block(channel=8, b=1, gamma=2) -> kernel_size 3.
    channel, b, gamma = 8, 1, 2
    ks = int(abs((math.log(channel, 2) + b) / gamma))
    ks = ks if ks % 2 else ks + 1

    key = jax.random.PRNGKey(0)
    kx, kw = jax.random.split(key)

    N, C, H, W = 2, channel, 16, 16
    x = jax.random.normal(kx, (N, C, H, W), dtype=jnp.float32)

    # Deterministic conv1d weight init (PyTorch default: U(-1/sqrt(fan_in), +)).
    bound = 1.0 / math.sqrt(1 * ks)
    conv_w = jax.random.uniform(kw, (1, 1, ks), minval=-bound, maxval=bound,
                                dtype=jnp.float32)

    out = eca_block_forward(x, conv_w)
    out = jax.block_until_ready(out)

    ref = eca_reference(x, conv_w)
    assert out.shape == (N, C, H, W)
    assert jnp.allclose(out, ref, atol=1e-5, rtol=1e-5)

    print("KERNEL_OK")
</pallas_src>

<mosaic_0001>
module attributes {stable_mosaic.version = 11 : i64} {
  func.func @kernel(%arg0: i32, %arg1: memref<3xf32, #tpu.memory_space<smem>>, %arg2: memref<1x8x256xf32, #tpu.memory_space<vmem>>, %arg3: memref<1x8x256xf32, #tpu.memory_space<vmem>>) attributes {dimension_semantics = [#tpu.dimension_semantics<parallel>], iteration_bounds = array<i64: 2>, scalar_prefetch = 0 : i64, scratch_operands = 0 : i64, tpu.core_type = #tpu.core_type<tc>, window_params = [{transform_indices = @transform_0, window_bounds = array<i64: 3>}, {transform_indices = @transform_1, window_bounds = array<i64: 1, 8, 256>}, {transform_indices = @transform_2, window_bounds = array<i64: 1, 8, 256>}]} {
    %c0 = arith.constant 0 : index
    %c0_0 = arith.constant 0 : index
    %c0_1 = arith.constant 0 : index
    %0 = vector.load %arg2[%c0, %c0_0, %c0_1] : memref<1x8x256xf32, #tpu.memory_space<vmem>>, vector<1x8x256xf32>
    %cst = arith.constant dense<0.000000e+00> : vector<1x8xf32>
    %1 = vector.multi_reduction <add>, %0, %cst [2] : vector<1x8x256xf32> to vector<1x8xf32>
    %2 = vector.shape_cast %1 : vector<1x8xf32> to vector<1x8x1xf32>
    %cst_2 = arith.constant 3.906250e-03 : f32
    %3 = vector.broadcast %cst_2 : f32 to vector<1x8x1xf32>
    %4 = arith.mulf %2, %3 : vector<1x8x1xf32>
    %cst_3 = arith.constant 0.000000e+00 : f32
    %5 = vector.broadcast %cst_3 : f32 to vector<1x8x1xf32>
    %6 = tpu.iota {dimensions = array<i32: 1>} : vector<1x8x1xi32>
    %c1_i32 = arith.constant 1 : i32
    %7 = tpu.dynamic_rotate %4 by %c1_i32 dim 1 : vector<1x8x1xf32>, i32 -> vector<1x8x1xf32>
    %c-1_i32 = arith.constant -1 : i32
    %8 = vector.broadcast %c-1_i32 : i32 to vector<1x8x1xi32>
    %9 = arith.addi %6, %8 : vector<1x8x1xi32>
    %c0_i32 = arith.constant 0 : i32
    %10 = vector.broadcast %c0_i32 : i32 to vector<1x8x1xi32>
    %11 = arith.cmpi sge, %9, %10 : vector<1x8x1xi32>
    %c-1_i32_4 = arith.constant -1 : i32
    %12 = vector.broadcast %c-1_i32_4 : i32 to vector<1x8x1xi32>
    %13 = arith.addi %6, %12 : vector<1x8x1xi32>
    %c8_i32 = arith.constant 8 : i32
    %14 = vector.broadcast %c8_i32 : i32 to vector<1x8x1xi32>
    %15 = arith.cmpi slt, %13, %14 : vector<1x8x1xi32>
    %16 = arith.andi %11, %15 : vector<1x8x1xi1>
    %c0_5 = arith.constant 0 : index
    %17 = memref.load %arg1[%c0_5] : memref<3xf32, #tpu.memory_space<smem>>
    %cst_6 = arith.constant 0.000000e+00 : f32
    %18 = vector.broadcast %cst_6 : f32 to vector<1x8x1xf32>
    %19 = arith.select %16, %7, %18 : vector<1x8x1xi1>, vector<1x8x1xf32>
    %20 = vector.broadcast %17 : f32 to vector<1x8x1xf32>
    %21 = arith.mulf %20, %19 : vector<1x8x1xf32>
    %22 = arith.addf %5, %21 : vector<1x8x1xf32>
    %c1 = arith.constant 1 : index
    %23 = memref.load %arg1[%c1] : memref<3xf32, #tpu.memory_space<smem>>
    %24 = vector.broadcast %23 : f32 to vector<1x8x1xf32>
    %25 = arith.mulf %24, %4 : vector<1x8x1xf32>
    %26 = arith.addf %22, %25 : vector<1x8x1xf32>
    %c7_i32 = arith.constant 7 : i32
    %27 = tpu.dynamic_rotate %4 by %c7_i32 dim 1 : vector<1x8x1xf32>, i32 -> vector<1x8x1xf32>
    %c1_i32_7 = arith.constant 1 : i32
    %28 = vector.broadcast %c1_i32_7 : i32 to vector<1x8x1xi32>
    %29 = arith.addi %6, %28 : vector<1x8x1xi32>
    %c0_i32_8 = arith.constant 0 : i32
    %30 = vector.broadcast %c0_i32_8 : i32 to vector<1x8x1xi32>
    %31 = arith.cmpi sge, %29, %30 : vector<1x8x1xi32>
    %c1_i32_9 = arith.constant 1 : i32
    %32 = vector.broadcast %c1_i32_9 : i32 to vector<1x8x1xi32>
    %33 = arith.addi %6, %32 : vector<1x8x1xi32>
    %c8_i32_10 = arith.constant 8 : i32
    %34 = vector.broadcast %c8_i32_10 : i32 to vector<1x8x1xi32>
    %35 = arith.cmpi slt, %33, %34 : vector<1x8x1xi32>
    %36 = arith.andi %31, %35 : vector<1x8x1xi1>
    %c2 = arith.constant 2 : index
    %37 = memref.load %arg1[%c2] : memref<3xf32, #tpu.memory_space<smem>>
    %cst_11 = arith.constant 0.000000e+00 : f32
    %38 = vector.broadcast %cst_11 : f32 to vector<1x8x1xf32>
    %39 = arith.select %36, %27, %38 : vector<1x8x1xi1>, vector<1x8x1xf32>
    %40 = vector.broadcast %37 : f32 to vector<1x8x1xf32>
    %41 = arith.mulf %40, %39 : vector<1x8x1xf32>
    %42 = arith.addf %26, %41 : vector<1x8x1xf32>
    %43 = arith.negf %42 : vector<1x8x1xf32>
    %44 = math.exp %43 : vector<1x8x1xf32>
    %cst_12 = arith.constant 1.000000e+00 : f32
    %45 = vector.broadcast %cst_12 : f32 to vector<1x8x1xf32>
    %46 = arith.addf %45, %44 : vector<1x8x1xf32>
    %47 = arith.divf %45, %46 : vector<1x8x1xf32>
    %48 = vector.broadcast %47 : vector<1x8x1xf32> to vector<1x8x256xf32>
    %49 = arith.mulf %0, %48 : vector<1x8x256xf32>
    %c0_13 = arith.constant 0 : index
    %c0_14 = arith.constant 0 : index
    %c0_15 = arith.constant 0 : index
    %50 = vector.load %arg3[%c0_13, %c0_14, %c0_15] : memref<1x8x256xf32, #tpu.memory_space<vmem>>, vector<1x8x256xf32>
    tpu.vector_store %arg3[%c0_13, %c0_14, %c0_15], %49 {strides = array<i32>} : memref<1x8x256xf32, #tpu.memory_space<vmem>>, vector<1x8x256xf32>,
    return
  }
  func.func @transform_0(%arg0: i32) -> i32 {
    %c0_i32 = arith.constant 0 : i32
    %c0_i32_0 = arith.constant 0 : i32
    return %c0_i32 : i32
  }
  func.func @transform_1(%arg0: i32) -> (i32, i32, i32) {
    %c0_i32 = arith.constant 0 : i32
    %c0_i32_0 = arith.constant 0 : i32
    %c0_i32_1 = arith.constant 0 : i32
    return %arg0, %c0_i32, %c0_i32_0 : i32, i32, i32
  }
  func.func @transform_2(%arg0: i32) -> (i32, i32, i32) {
    %c0_i32 = arith.constant 0 : i32
    %c0_i32_0 = arith.constant 0 : i32
    %c0_i32_1 = arith.constant 0 : i32
    return %arg0, %c0_i32, %c0_i32_0 : i32, i32, i32
  }
}

</mosaic_0001>

<bundles_post_ra>
// kernel: tpu_custom_call.1
= control target key start
LH: loop header
LB: loop body
LE: loop exit
PB: predicated region body
PF: predicated region fallthrough
CT: control target
= control target key end

     0   :  { %7 = vsyncpa [#allocation5], 0  ;;  %s695_s0 = inlined_call_operand.hbm [shape: f32[3], index: 0, kind: input, shape index: {}]   ;;  %s696_s1 = inlined_call_operand.hbm [shape: f32[2,8,256], index: 1, kind: input, shape index: {}]   ;;  %s697_s2 = inlined_call_operand.hbm [shape: f32[2,8,256], index: 2, kind: output, shape index: {}]  }
   0x1   :  { %8 = vsyncpa [#allocation3], 0 }
   0x2   :  { %10 = vsyncpa [#allocation3 + $0x1], 0 }
   0x3   :  { %11 = vsyncpa [#allocation4], 0 }
   0x4   :  { %13 = vsyncpa [#allocation4 + $0x1], 0  ;;  %s553_s9 = smov 0   ;;  %s555_s10 = smov 0  }
   0x5   :  { %s557_s11 = smov 0   ;;  %s559_s12 = smov 0  }
   0x6 LB: > { %s574_s13 = sadd.s32 4294967295, %s534_s12   ;;  %s335_s14 = sadd.s32 4294967294, %s534_s12   ;;  %s534_s12 = sphi %s559_s12, %s707_s12   ;;  %s530_s11 = sphi %s557_s11, %s706_s11   ;;  %s526_s10 = sphi %s555_s10, %s705_s10   ;;  %s522_s9 = sphi %s553_s9, %s704_s9  }
   0x7   : > { %p60_p0 = scmp.ne.s32.totalorder %s526_s10, %s522_s9  ;;  %p61_p1 = scmp.eq.s32.totalorder %s574_s13, 0 }
   0x8   : > { %p84_p2 = scmp.eq.s32.totalorder %s574_s13, 1  ;;  %p90_p3 = scmp.eq.s32.totalorder %s335_s14, 1 }
   0x9   : > { %p583_p4 = por %p61_p1, %p60_p0  ;;  %p336_p5 = scmp.ge.s32.totalorder %s534_s12, 1 }
   0xa   : > { %p588_p6 = por %p90_p3, %p60_p0  ;;  %p97_p7 = scmp.lt.s32.totalorder %s534_s12, 3 }
   0xb   : > { %s109_s19 = sshll.u32 %s695_s0, 4  ;;  %s604_s21 = sadd.s32 1, %s534_s12   ;;  %s110_s19 = int_to_ptr.hbm [resolvable:$true] %s109_s19 }
   0xc   : > { %p596_p8 = pnand %p336_p5, %p97_p7  ;;  %s44_s22 = ssub.s32 %s534_s12, %s604_s21 }
   0xd   : > { %p45_p12 = scmp.eq.s32.totalorder %s44_s22, 0  ;;  %s47_s23 = sadd.s32 1, %s530_s11 }
   0xe   : > { %p364_p10 = pneg %p596_p8  ;;  %p54_p13 = scmp.ne.s32.totalorder %s530_s11, %s526_s10 }
   0xf   : > { %s536_s24 = smov [#allocation2]   ;;  %p55_p0 = scmp.eq.s32.totalorder %s534_s12, 0 }
  0x10   : > { %p365_p11 = pnand %p364_p10, %p61_p1  ;;  %p619_p3 = por %p84_p2, %p54_p13 }
  0x11   : > { %s614_s25 = scalar_select %p45_p12, %s530_s11, %s47_s23  }
  0x12   : > { %367 = dma.hbm_to_smem (!%p365_p11), %s110_s19, 16, %s536_s24, [#allocation5]  }
  0x13   : > { %s120_s27 = sand.u32 1, %s530_s11   ;;  %p56_p5 = por %p55_p0, %p54_p13 }
  0x14   : > { %p377_p7 = scmp.lt.s32.totalorder %s534_s12, 2  ;;  %s339_s28 = sshll.u32 %s120_s27, 4 }
  0x15   : > { %s354_s29 = sshll.u32 %s534_s12, 4  ;;  %s124_s6 = scalar_lea.vmem [#allocation6], %s339_s28 }
  0x16   : > { %s129_s4 = scalar_lea.hbm %s696_s1, %s354_s29  ;;  %s133_s7 = sshll.u32 %s124_s6, 4  ;;  %s134_s7 = int_to_ptr.vmem [resolvable:$true] %s133_s7 }
  0x17   : > { %s131_s5 = sshll.u32 %s129_s4, 4  ;;  %p629_p10 = pnand %p377_p7, %p56_p5  ;;  %s132_s5 = int_to_ptr.hbm [resolvable:$true] %s131_s5 }
  0x18   : > { %s121_s14 = scalar_lea.sflag [#allocation3], %s120_s27  ;;  %s434_s17 = sshra.s32 %s132_s5, 4  ;;  %s435_s17 = int_to_ptr.hbm [resolvable:$true] %s434_s17 }
  0x19   : > { %s436_s18 = scalar_lea.hbm %s435_s17, 16  ;;  %p438_p11 = pneg %p629_p10 }
  0x1a   : > { %p437_p2 = scmp.ne.s32.totalorder %s435_s17, %s436_s18  ;;  %s441_s23 = scalar_lea.hbm %s696_s1, 32 }
  0x1b   : > { %p442_p0 = scmp.lt.s32.totalorder %s435_s17, %s696_s1  ;;  %p443_p5 = scmp.lt.s32.totalorder %s441_s23, %s436_s18 }
  0x1c   : > { %p439_p12 = pnand %p438_p11, %p437_p2 }
  0x1d   : > { %p444_p7 = por %p443_p5, %p442_p0 }
  0x1e   : > { %p440_p13 = pneg %p439_p12 }
  0x20   : > { %p445_p9 = pnand %p444_p7, %p440_p13 }
  0x22   : > { %448 = shalt.err (!%p445_p9)
}
  0x23   : > { %371 = dma.hbm_to_vmem [thread:$0]  (!%p629_p10), %s132_s5, 256, %s134_s7, %s121_s14  }
  0x24   : > { %142 = sbr.rel (%p596_p8) target bundleno = 327 (0x147), region = 28 }
  0x29   : > { %509 = dma.done.wait (%p61_p1), [#allocation5], 16  }
  0x2a   : > { %511 = vsyncadd (%p61_p1), [#allocation5], 4294967280  ;;  %s650_s27 = sand.u32 1, %s526_s10  }
  0x2b   : > { %s344_s29 = sshll.u32 %s650_s27, 4  ;;  %s150_s30 = scalar_lea.sflag [#allocation3], %s650_s27 }
  0x2c   : > { %s153_s3 = scalar_lea.vmem [#allocation6], %s344_s29 }
  0x2d   : > { %513 = dma.done.wait (%p583_p4), %s150_s30, 256  }
  0x2e   : > { %515 = vsyncadd (%p583_p4), %s150_s30, 4294967040 }
  0x2f   : > { %159 = sfence }
  0x30   : > { %v176_v0 = vld [vmem:[%s153_s3] sm:$0xff]  ;;  %v177_v1 = vld [vmem:[%s153_s3 + $0x8] sm:$0xff]  ;;  %v182_v3 = vlaneseq  ;;  %v537_v4 = vmov 0   ;;  %s189_s20 = sld [smem:[#allocation2]]  ;;  %s355_s15 = sshll.u32 %s574_s13, 4 }
  0x31   : > { %v178_v2 = vadd.f32 %v177_v1, %v176_v0  ;;  %414 = vset.pattern.permute.xlu0 %v537_v4  ;;  %s346_s4 = sld [smem:[#allocation2 + $0x1]]  ;;  %s248_s8 = scalar_lea.hbm %s697_s2, %s355_s15 }
  0x32   : > { %v183_v5 = vshrl.u32 %v182_v3, 7  ;;  %s347_s5 = sld [smem:[#allocation2 + $0x2]]  ;;  %s175_s14 = scalar_lea.vmem [#allocation7], %s344_s29 }
  0x33   : > { %179 = vadd.xlane.f32.xlu0 %v178_v2  ;;  %s250_s17 = sshll.u32 %s175_s14, 4  ;;  %s252_s18 = sshll.u32 %s248_s8, 4  ;;  %s251_s17 = int_to_ptr.vmem [resolvable:$true] %s250_s17  ;;  %s253_s18 = int_to_ptr.hbm [resolvable:$true] %s252_s18 }
  0x34   : > { %v185_v6 = vadd.s32 4294967295, %v183_v5  ;;  %v199_v7 = vadd.s32 1, %v183_v5  ;;  %s237_s19 = scalar_lea.sflag [#allocation4], %s650_s27  ;;  %s478_s22 = sshra.s32 %s253_s18, 4  ;;  %s479_s22 = int_to_ptr.hbm [resolvable:$true] %s478_s22 }
  0x35   : > { %s480_s13 = scalar_lea.hbm %s479_s22, 16  ;;  %s484_s28 = scalar_lea.hbm %s697_s2, 32 }
  0x36   : > { %vm186_vm0 = vcmp.ge.s32.totalorder %v185_v6, 0  ;;  %vm201_vm1 = vcmp.lt.s32.totalorder %v199_v7, 8  ;;  %v191_v10 = vstv %s189_s20  ;;  %p481_p1 = scmp.ne.s32.totalorder %s479_s22, %s480_s13  ;;  %p485_p9 = scmp.lt.s32.totalorder %s479_s22, %s697_s2 }
  0x37   : > { %v195_v11 = vstv %s346_s4  ;;  %p486_p10 = scmp.lt.s32.totalorder %s484_s28, %s480_s13 }
  0x38   : > { %v205_v14 = vstv %s347_s5  ;;  %p482_p4 = pnand %p481_p1, %p619_p3 }
  0x39   : > { %p487_p2 = por %p486_p10, %p485_p9 }
  0x3a   : > { %p483_p8 = pneg %p482_p4 }
  0x3c   : > { %p488_p11 = pnand %p487_p2, %p483_p8 }
  0xa6   : > { %v180_v8 = vpop.xlane.xlu0 %179 }
  0xa7   : > { %v181_v9 = vmul.f32 0.00390625, %v180_v8 }
  0xa9   : > { %v184_v12 = vrot.slane %v181_v9, 7  ;;  %v198_v13 = vrot.slane %v181_v9, 1  ;;  %v196_v18 = vmul.f32 %v195_v11, %v181_v9 }
  0xab   : > { %v190_v15 = vsel %vm186_vm0, %v184_v12, 0.0  ;;  %v204_v16 = vsel %vm201_vm1, %v198_v13, 0.0 }
  0xac   : > { %v192_v17 = vmul.f32 %v191_v10, %v190_v15  ;;  %v206_v20 = vmul.f32 %v205_v14, %v204_v16 }
  0xae   : > { %v197_v19 = vadd.f32 %v196_v18, %v192_v17 }
  0xb0   : > { %v207_v21 = vadd.f32 %v206_v20, %v197_v19 }
  0xb2   : > { %v348_v22 = vmul.f32 -1.442695, %v207_v21 }
  0xb4   : > { %415 = vpow2.f32 %v348_v22 }
  0xba   : > { %v416_v23 = vpop.eup %415 }
  0xbb   : > { %v211_v24 = vadd.f32 1.0, %v416_v23 }
  0xbd   : > { %417 = vrcp.f32 %v211_v24  ;;  %v223_v28 = vand.u32 2147483648, %v211_v24  ;;  %v221_v30 = vand.u32 2147483647, %v211_v24  ;;  %vm217_vm3 = vweird.f32 %v211_v24 }
  0xbf   : > { %v224_v32 = vor.u32 1.1754944e-38, %v223_v28  ;;  %vm222_vm5 = vcmp.eq.f32.partialorder %v221_v30, 8.507059e+37 }
  0xc3   : > { %v418_v25 = vpop.eup %417 }
  0xc4   : > { %v213_v26 = vmul.f32 %v418_v25, %v211_v24  ;;  %vm218_vm2 = vweird.f32 %v418_v25 }
  0xc5   : > { %vm219_vm4 = vmor %vm217_vm3, %vm218_vm2 }
  0xc6   : > { %v214_v27 = vsub.f32 1.0, %v213_v26 }
  0xc8   : > { %v215_v29 = vmul.f32 %v418_v25, %v214_v27 }
  0xca   : > { %v216_v31 = vadd.f32 %v418_v25, %v215_v29 }
  0xcc   : > { %v220_v33 = vsel %vm219_vm4, %v418_v25, %v216_v31 }
  0xcd   : > { %v225_v34 = vsel %vm222_vm5, %v224_v32, %v220_v33 }
  0xce   : > { %229 = vperm.xlu0 %414, %v225_v34  }
 0x140   : > { %v230_v35 = vpop.permute.xlu0 %229 }
 0x141   : > { %v232_v36 = vmul.f32 %v230_v35, %v176_v0  ;;  %v233_v37 = vmul.f32 %v230_v35, %v177_v1 }
 0x143   : > { %234 = vst [vmem:[%s175_s14] sm:$0xff] %v232_v36 }
 0x144   : > { %235 = vst [vmem:[%s175_s14 + $0x8] sm:$0xff] %v233_v37 }
 0x145   : > { %491 = shalt.err (!%p488_p11)
}
 0x146   : > { %362 = dma.vmem_to_hbm [thread:$0]  (%p619_p3), %s251_s17, 256, %s253_s18, %s237_s19  }
 0x147 PF: > { %s264_s27 = sand.u32 1, %s522_s9   ;;  %p703_p12 = scmp.ge.s32.totalorder %s534_s12, 2 }
 0x148   : > { %s265_s3 = scalar_lea.sflag [#allocation4], %s264_s27 }
 0x149   : > { %p373_p13 = pnand %p703_p12, %p588_p6 }
 0x14b   : > { %p374_p0 = pneg %p373_p13 }
 0x14d   : > { %517 = dma.done.wait (%p374_p0), %s265_s3, 256  }
 0x14e   : > { %519 = vsyncadd (%p374_p0), %s265_s3, 4294967040  ;;  %p16_p5 = scmp.ge.s32.totalorder %s604_s21, 4   ;;  %s704_s9 = smov %s526_s10 }
 0x14f   : > { %s705_s10 = smov %s530_s11  ;;  %s706_s11 = smov %s614_s25 }
 0x150   : > { %s707_s12 = smov %s604_s21  ;;  %18 = sbr.rel (!%p16_p5) target bundleno = 6 (0x6), region = 78 }
 0x155   :  { %271 = vsyncpa [#allocation3], 1 }
 0x156   :  { %273 = vsyncpa [#allocation3 + $0x1], 1 }
 0x157   :  { %274 = vsyncpa [#allocation4], 1 }
 0x158   :  { %276 = vsyncpa [#allocation4 + $0x1], 1 }
 0x159   :  { %277 = vsyncpa [#allocation5], 1 }
 0x15a   :  { %279 = vsyncpa [#allocation5 + $0x1], 1 }

</bundles_post_ra>
